<compile_context>
chip_gen: v7x
topology: tpu7x:2x2x1
jax: 0.10.0
libtpu: 0.0.40
codegen_flags: <defaults>
</compile_context>

<pallas_src>
import jax
import jax.numpy as jnp
from jax.experimental import pallas as pl
from jax.experimental.pallas import tpu as pltpu


def _dma_copy_kernel(emb_hbm, out_hbm, copy_sem):
    # emb_hbm : raw HBM ref, (seq_len, model_dim)
    # out_hbm : raw HBM ref, (sl, model_dim)
    # copy_sem: DMA completion semaphore
    sl = out_hbm.shape[0]  # static
    cp = pltpu.make_async_copy(
        emb_hbm.at[pl.ds(0, sl), :],  # explicit slice: manual DMA has no masking
        out_hbm,
        copy_sem,
    )
    cp.start()
    cp.wait()


def learned_position_embeddings(x, emb_weight):
    """Pallas equivalent of LearnedPositionEmbeddings.forward (relative=False).

    Returns emb_weight[:x.shape[1]] of shape (sl, model_dim), produced by a
    single direct HBM->HBM DMA (no VMEM staging, no grid loop).
    """
    sl = x.shape[1]
    seq_len, model_dim = emb_weight.shape
    assert sl <= seq_len, "sequence length exceeds embedding table size"

    dtype_bytes = jnp.dtype(emb_weight.dtype).itemsize
    out = pl.pallas_call(
        _dma_copy_kernel,
        out_shape=jax.ShapeDtypeStruct((sl, model_dim), emb_weight.dtype),
        # Raw HBM refs on both sides: kernel issues the one DMA itself.
        in_specs=[pl.BlockSpec(memory_space=pl.ANY)],
        out_specs=pl.BlockSpec(memory_space=pl.ANY),
        scratch_shapes=[pltpu.SemaphoreType.DMA(())],
        # Mem-bound copy hint so XLA schedules/overlaps neighbors sensibly.
        cost_estimate=pl.CostEstimate(
            flops=0,
            transcendentals=0,
            bytes_accessed=2 * sl * model_dim * dtype_bytes,
        ),
    )(emb_weight)
    return out


if __name__ == "__main__":
    key = jax.random.PRNGKey(0)
    k_w, k_x = jax.random.split(key)

    seq_len = 16      # max positions (embedding table rows)
    model_dim = 128   # lane-dense last dim (multiple of 128)
    batch, sl = 2, 8

    # Deterministic "learned" weights: normal(0, 0.02), as in __init__.
    emb_weight = (jax.random.normal(k_w, (seq_len, model_dim), dtype=jnp.float32)
                  * 0.02)
    # Dummy input; only its sequence length (axis 1) matters.
    x = jax.random.normal(k_x, (batch, sl, model_dim), dtype=jnp.float32)

    out = learned_position_embeddings(x, emb_weight)
    out = jax.block_until_ready(out)

    # Reference: emb(arange(0, sl)) == first sl rows of the table.
    ref = emb_weight[:sl]
    assert out.shape == (sl, model_dim)
    assert jnp.allclose(out, ref), "mismatch vs reference embedding gather"

    print("KERNEL_OK")
</pallas_src>

<mosaic_0001>
module attributes {stable_mosaic.version = 11 : i64} {
  func.func @_dma_copy_kernel(%arg0: memref<16x128xf32, #tpu.memory_space<any>>, %arg1: memref<8x128xf32, #tpu.memory_space<any>>, %arg2: memref<!tpu.dma_semaphore, #tpu.memory_space<semaphore_mem>>) attributes {dimension_semantics = [], scalar_prefetch = 0 : i64, scratch_operands = 1 : i64, tpu.core_type = #tpu.core_type<tc>} {
    %c0_i32 = arith.constant 0 : i32
    %c0_i32_0 = arith.constant 0 : i32
    %0 = tpu.memref_slice %arg0[%c0_i32, %c0_i32_0] : memref<16x128xf32, #tpu.memory_space<any>> -> memref<8x128xf32, #tpu.memory_space<any>>
    tpu.enqueue_dma source(%0 : memref<8x128xf32, #tpu.memory_space<any>>) target(%arg1 : memref<8x128xf32, #tpu.memory_space<any>>) target_semaphore(%arg2 : memref<!tpu.dma_semaphore, #tpu.memory_space<semaphore_mem>>)
    %c0_i32_1 = arith.constant 0 : i32
    %c0_i32_2 = arith.constant 0 : i32
    %1 = tpu.memref_slice %arg0[%c0_i32_1, %c0_i32_2] : memref<16x128xf32, #tpu.memory_space<any>> -> memref<8x128xf32, #tpu.memory_space<any>>
    tpu.wait_dma2 semaphore(%arg2 : memref<!tpu.dma_semaphore, #tpu.memory_space<semaphore_mem>>) src(%1 : memref<8x128xf32, #tpu.memory_space<any>>) dst(%arg1 : memref<8x128xf32, #tpu.memory_space<any>>)
    return
  }
}

</mosaic_0001>

<bundles_post_ra>
// kernel: tpu_custom_call.1
= control target key start
LH: loop header
LB: loop body
LE: loop exit
PB: predicated region body
PF: predicated region fallthrough
CT: control target
= control target key end

     0   :  { %s34_s6 = smov [#allocation2]   ;;  %s35_s7 = smov [#allocation3]   ;;  %s53_s0 = inlined_call_operand.hbm [shape: f32[16,128], index: 0, kind: input, shape index: {}]   ;;  %s54_s1 = inlined_call_operand.hbm [shape: f32[8,128], index: 1, kind: output, shape index: {}]  }
   0x1   :  { %s36_s8 = smov 0  }
   0x2   :  { %18 = dma.general %s53_s0, 128, %s54_s1, %s34_s6, %s35_s7, [#allocation4], %s36_s8, 0  }
   0x3   :  { %32 = dma.done.wait [#allocation2], 128 }
   0x4   :  { %33 = vsyncadd [#allocation2], 4294967168 }
   0x5   :  { %22 = vsyncmov [#allocation2] }
   0x8   :  { %s23_s13 = vpop.sfrf %22 }
   0x9   :  { %p28_p0 = scmp.ne.s32.totalorder %s23_s13, 0 }
   0xb   :  { %27 = shalt.err (%p28_p0)  }

</bundles_post_ra>
